<compile_context>
chip_gen: v7x
topology: tpu7x:2x2x1
jax: 0.10.0
libtpu: 0.0.40
codegen_flags: <defaults>
</compile_context>

<pallas_src>
import functools

import jax
import jax.numpy as jnp
from jax.experimental import pallas as pl
from jax.experimental.pallas import tpu as pltpu

_LANES = 128


def _gdl_kernel(logits_ref, labels_ref, num_ref, den_ref, tgt_ref,
                *, lanes, needs_mask):
    """Per-(batch, pixel-tile) grid step.

    logits_ref: (C, tile) native dtype     labels_ref: (1, tile) int32
    num_ref/den_ref/tgt_ref: (C, lanes) f32 resident per-batch partial sums.
    """
    i = pl.program_id(1)  # pixel-tile index (reduction axis)

    @pl.when(i == 0)
    def _():
        num_ref[...] = jnp.zeros_like(num_ref)
        den_ref[...] = jnp.zeros_like(den_ref)
        tgt_ref[...] = jnp.zeros_like(tgt_ref)

    x = logits_ref[...].astype(jnp.float32)            # (C, tile)
    C, tile = x.shape

    # softmax over classes (sublane axis), one reciprocal per pixel
    m = jnp.max(x, axis=0, keepdims=True)              # (1, tile)
    e = jnp.exp(x - m)
    inv_s = 1.0 / jnp.sum(e, axis=0, keepdims=True)    # (1, tile)
    p = e * inv_s                                      # (C, tile)

    # one-hot target built in-kernel
    lab = labels_ref[...]                              # (1, tile) int32
    cls_ids = jax.lax.broadcasted_iota(jnp.int32, (C, tile), 0)
    onehot = (cls_ids == lab).astype(jnp.float32)      # (C, tile)

    if needs_mask:
        # padded pixels carry label -1: onehot rows are already zero there,
        # but softmax probs must be zeroed so they don't pollute sum(p^2).
        valid = (lab >= 0).astype(jnp.float32)         # (1, tile)
        p = p * valid

    # lane-dense partial accumulation: fold the tile into 128-lane chunks with
    # VPU adds only; the cross-lane reduction happens once in the wrapper.
    chunks = tile // lanes
    num_p = jnp.zeros((C, lanes), jnp.float32)
    den_p = jnp.zeros((C, lanes), jnp.float32)
    tgt_p = jnp.zeros((C, lanes), jnp.float32)
    for c in range(chunks):
        sl = slice(c * lanes, (c + 1) * lanes)
        pc = p[:, sl]
        oc = onehot[:, sl]
        num_p = num_p + pc * oc
        den_p = den_p + pc * pc
        tgt_p = tgt_p + oc
    num_ref[...] += num_p
    den_ref[...] += den_p
    tgt_ref[...] += tgt_p


def _pick_tile(hw_pad, max_tile):
    """Largest multiple of 128 that divides hw_pad and is <= max_tile."""
    best = _LANES
    t = _LANES
    while t <= min(hw_pad, max_tile):
        if hw_pad % t == 0:
            best = t
        t += _LANES
    return best


def generalized_dice_loss(logits, labels, n_class, epsilon=1e-7,
                          max_tile=8192):
    """logits: (N, C, H, W) float (any dtype); labels: (N, H, W) int.

    Returns the scalar generalized dice loss (f32), matching the PyTorch
    GeneralizedDiceLoss.forward.
    """
    N, C, H, W = logits.shape
    assert C == n_class
    HW = H * W
    hw_pad = ((HW + _LANES - 1) // _LANES) * _LANES

    # Free, contiguous reshapes (no transpose / no dtype upcast in HBM).
    x = logits.reshape(N, C, HW)
    t = labels.reshape(N, 1, HW).astype(jnp.int32)

    needs_mask = hw_pad != HW
    if needs_mask:
        pad = hw_pad - HW
        x = jnp.pad(x, ((0, 0), (0, 0), (0, pad)))
        t = jnp.pad(t, ((0, 0), (0, 0), (0, pad)), constant_values=-1)

    tile = _pick_tile(hw_pad, max_tile)
    grid = (N, hw_pad // tile)

    out_shape = jax.ShapeDtypeStruct((N, C, _LANES), jnp.float32)
    out_spec = pl.BlockSpec((None, C, _LANES), lambda n, i: (n, 0, 0))

    num_p, den_p, tgt_p = pl.pallas_call(
        functools.partial(_gdl_kernel, lanes=_LANES, needs_mask=needs_mask),
        out_shape=(out_shape, out_shape, out_shape),
        grid_spec=pltpu.PrefetchScalarGridSpec(
            num_scalar_prefetch=0,
            grid=grid,
            in_specs=[
                pl.BlockSpec((None, C, tile), lambda n, i: (n, 0, i)),
                pl.BlockSpec((None, 1, tile), lambda n, i: (n, 0, i)),
            ],
            out_specs=(out_spec, out_spec, out_spec),
        ),
        compiler_params=pltpu.CompilerParams(
            dimension_semantics=("parallel", "arbitrary")),
    )(x, t)

    # Tiny finalize (C floats) in plain JAX: cross-lane + cross-batch reduce,
    # class weights, weighted dice.
    num = jnp.sum(num_p, axis=(0, 2))          # sum softmax * onehot
    den_p2 = jnp.sum(den_p, axis=(0, 2))       # sum softmax^2
    tgt = jnp.sum(tgt_p, axis=(0, 2))          # sum onehot (== sum onehot^2)
    den = den_p2 + tgt

    w = 1.0 / (tgt * tgt + epsilon)
    infs = jnp.isinf(w)                        # mirrors the PyTorch reference
    w = jnp.where(infs, 0.0, w)
    w = w + infs.astype(w.dtype) * jnp.max(w)

    dice = 2.0 * jnp.dot(w, num) / jnp.dot(w, den)
    return 1.0 - dice


def _reference(logits, labels, n_class, epsilon=1e-7):
    """Plain-JAX transcription of the PyTorch forward (for verification)."""
    p = jax.nn.softmax(logits.astype(jnp.float32), axis=1)           # (N,C,H,W)
    p = jnp.transpose(p, (1, 0, 2, 3)).reshape(n_class, -1)          # (C, P)
    t = jax.nn.one_hot(labels, n_class, dtype=jnp.float32)           # (N,H,W,C)
    t = jnp.transpose(t, (3, 0, 1, 2)).reshape(n_class, -1)          # (C, P)
    num = jnp.sum(p * t, axis=1)
    den = jnp.sum(p * p, axis=1) + jnp.sum(t * t, axis=1)
    w = 1.0 / (jnp.sum(t, axis=1) ** 2 + epsilon)
    infs = jnp.isinf(w)
    w = jnp.where(infs, 0.0, w)
    w = w + infs.astype(jnp.float32) * jnp.max(w)
    dice = 2.0 * jnp.dot(w, num) / jnp.dot(w, den)
    return 1.0 - dice


if __name__ == "__main__":
    N, C, H, W = 2, 4, 16, 16
    key = jax.random.PRNGKey(0)
    k1, k2 = jax.random.split(key)
    logits = jax.random.normal(k1, (N, C, H, W), dtype=jnp.float32)
    labels = jax.random.randint(k2, (N, H, W), minval=0, maxval=C,
                                dtype=jnp.int32)

    loss = jax.block_until_ready(generalized_dice_loss(logits, labels,
                                                       n_class=C))
    ref = jax.block_until_ready(_reference(logits, labels, n_class=C))
    assert jnp.allclose(loss, ref, rtol=1e-5, atol=1e-6), (loss, ref)

    print("KERNEL_OK")
</pallas_src>

<mosaic_0001>
module attributes {stable_mosaic.version = 11 : i64} {
  func.func @_gdl_kernel(%arg0: i32, %arg1: i32, %arg2: memref<1x4x256xf32, #tpu.memory_space<vmem>>, %arg3: memref<1x1x256xi32, #tpu.memory_space<vmem>>, %arg4: memref<1x4x128xf32, #tpu.memory_space<vmem>>, %arg5: memref<1x4x128xf32, #tpu.memory_space<vmem>>, %arg6: memref<1x4x128xf32, #tpu.memory_space<vmem>>) attributes {dimension_semantics = [#tpu.dimension_semantics<parallel>, #tpu.dimension_semantics<arbitrary>], iteration_bounds = array<i64: 2, 1>, scalar_prefetch = 0 : i64, scratch_operands = 0 : i64, tpu.core_type = #tpu.core_type<tc>, window_params = [{transform_indices = @transform_0, window_bounds = array<i64: 1, 4, 256>}, {transform_indices = @transform_1, window_bounds = array<i64: 1, 1, 256>}, {transform_indices = @transform_2, window_bounds = array<i64: 1, 4, 128>}, {transform_indices = @transform_3, window_bounds = array<i64: 1, 4, 128>}, {transform_indices = @transform_4, window_bounds = array<i64: 1, 4, 128>}]} {
    %c0_i32 = arith.constant 0 : i32
    %0 = arith.cmpi eq, %arg1, %c0_i32 : i32
    %1 = arith.extui %0 : i1 to i32
    %c0_i32_0 = arith.constant 0 : i32
    %2 = arith.cmpi ne, %1, %c0_i32_0 : i32
    scf.if %2 {
      %cst_29 = arith.constant 0.000000e+00 : f32
      %58 = vector.broadcast %cst_29 : f32 to vector<4x128xf32>
      %c0_30 = arith.constant 0 : index
      %c0_31 = arith.constant 0 : index
      %c0_32 = arith.constant 0 : index
      %59 = vector.load %arg4[%c0_30, %c0_31, %c0_32] : memref<1x4x128xf32, #tpu.memory_space<vmem>>, vector<1x4x128xf32>
      %60 = vector.shape_cast %59 : vector<1x4x128xf32> to vector<4x128xf32>
      %61 = vector.shape_cast %58 : vector<4x128xf32> to vector<1x4x128xf32>
      tpu.vector_store %arg4[%c0_30, %c0_31, %c0_32], %61 {strides = array<i32>} : memref<1x4x128xf32, #tpu.memory_space<vmem>>, vector<1x4x128xf32>,
      %cst_33 = arith.constant 0.000000e+00 : f32
      %62 = vector.broadcast %cst_33 : f32 to vector<4x128xf32>
      %c0_34 = arith.constant 0 : index
      %c0_35 = arith.constant 0 : index
      %c0_36 = arith.constant 0 : index
      %63 = vector.load %arg5[%c0_34, %c0_35, %c0_36] : memref<1x4x128xf32, #tpu.memory_space<vmem>>, vector<1x4x128xf32>
      %64 = vector.shape_cast %63 : vector<1x4x128xf32> to vector<4x128xf32>
      %65 = vector.shape_cast %62 : vector<4x128xf32> to vector<1x4x128xf32>
      tpu.vector_store %arg5[%c0_34, %c0_35, %c0_36], %65 {strides = array<i32>} : memref<1x4x128xf32, #tpu.memory_space<vmem>>, vector<1x4x128xf32>,
      %cst_37 = arith.constant 0.000000e+00 : f32
      %66 = vector.broadcast %cst_37 : f32 to vector<4x128xf32>
      %c0_38 = arith.constant 0 : index
      %c0_39 = arith.constant 0 : index
      %c0_40 = arith.constant 0 : index
      %67 = vector.load %arg6[%c0_38, %c0_39, %c0_40] : memref<1x4x128xf32, #tpu.memory_space<vmem>>, vector<1x4x128xf32>
      %68 = vector.shape_cast %67 : vector<1x4x128xf32> to vector<4x128xf32>
      %69 = vector.shape_cast %66 : vector<4x128xf32> to vector<1x4x128xf32>
      tpu.vector_store %arg6[%c0_38, %c0_39, %c0_40], %69 {strides = array<i32>} : memref<1x4x128xf32, #tpu.memory_space<vmem>>, vector<1x4x128xf32>,
    } else {
    }
    %c0 = arith.constant 0 : index
    %c0_1 = arith.constant 0 : index
    %c0_2 = arith.constant 0 : index
    %3 = vector.load %arg2[%c0, %c0_1, %c0_2] : memref<1x4x256xf32, #tpu.memory_space<vmem>>, vector<1x4x256xf32>
    %4 = vector.shape_cast %3 : vector<1x4x256xf32> to vector<4x256xf32>
    %cst = arith.constant dense<0xFF800000> : vector<256xf32>
    %5 = vector.multi_reduction <maximumf>, %4, %cst [0] : vector<4x256xf32> to vector<256xf32>
    %6 = vector.shape_cast %5 : vector<256xf32> to vector<1x256xf32>
    %7 = vector.broadcast %6 : vector<1x256xf32> to vector<4x256xf32>
    %8 = arith.subf %4, %7 : vector<4x256xf32>
    %9 = math.exp %8 : vector<4x256xf32>
    %cst_3 = arith.constant dense<0.000000e+00> : vector<256xf32>
    %10 = vector.multi_reduction <add>, %9, %cst_3 [0] : vector<4x256xf32> to vector<256xf32>
    %11 = vector.shape_cast %10 : vector<256xf32> to vector<1x256xf32>
    %cst_4 = arith.constant 1.000000e+00 : f32
    %12 = vector.broadcast %cst_4 : f32 to vector<1x256xf32>
    %13 = arith.divf %12, %11 : vector<1x256xf32>
    %14 = vector.broadcast %13 : vector<1x256xf32> to vector<4x256xf32>
    %15 = arith.mulf %9, %14 : vector<4x256xf32>
    %c0_5 = arith.constant 0 : index
    %c0_6 = arith.constant 0 : index
    %c0_7 = arith.constant 0 : index
    %16 = vector.load %arg3[%c0_5, %c0_6, %c0_7] : memref<1x1x256xi32, #tpu.memory_space<vmem>>, vector<1x1x256xi32>
    %17 = vector.shape_cast %16 : vector<1x1x256xi32> to vector<1x256xi32>
    %18 = tpu.iota {dimensions = array<i32: 0>} : vector<4x256xi32>
    %19 = vector.broadcast %17 : vector<1x256xi32> to vector<4x256xi32>
    %20 = arith.cmpi eq, %18, %19 : vector<4x256xi32>
    %21 = arith.extui %20 : vector<4x256xi1> to vector<4x256xi32>
    %22 = arith.sitofp %21 : vector<4x256xi32> to vector<4x256xf32>
    %cst_8 = arith.constant 0.000000e+00 : f32
    %23 = vector.broadcast %cst_8 : f32 to vector<4x128xf32>
    %cst_9 = arith.constant 0.000000e+00 : f32
    %24 = vector.broadcast %cst_9 : f32 to vector<4x128xf32>
    %cst_10 = arith.constant 0.000000e+00 : f32
    %25 = vector.broadcast %cst_10 : f32 to vector<4x128xf32>
    %26 = vector.extract_strided_slice %15 {offsets = [0, 0], sizes = [4, 128], strides = [1, 1]} : vector<4x256xf32> to vector<4x128xf32>
    %27 = vector.extract_strided_slice %22 {offsets = [0, 0], sizes = [4, 128], strides = [1, 1]} : vector<4x256xf32> to vector<4x128xf32>
    %28 = arith.mulf %26, %27 : vector<4x128xf32>
    %29 = arith.addf %23, %28 : vector<4x128xf32>
    %30 = arith.mulf %26, %26 : vector<4x128xf32>
    %31 = arith.addf %24, %30 : vector<4x128xf32>
    %32 = arith.addf %25, %27 : vector<4x128xf32>
    %33 = vector.extract_strided_slice %15 {offsets = [0, 128], sizes = [4, 128], strides = [1, 1]} : vector<4x256xf32> to vector<4x128xf32>
    %34 = vector.extract_strided_slice %22 {offsets = [0, 128], sizes = [4, 128], strides = [1, 1]} : vector<4x256xf32> to vector<4x128xf32>
    %35 = arith.mulf %33, %34 : vector<4x128xf32>
    %36 = arith.addf %29, %35 : vector<4x128xf32>
    %37 = arith.mulf %33, %33 : vector<4x128xf32>
    %38 = arith.addf %31, %37 : vector<4x128xf32>
    %39 = arith.addf %32, %34 : vector<4x128xf32>
    %c0_11 = arith.constant 0 : index
    %c0_12 = arith.constant 0 : index
    %c0_13 = arith.constant 0 : index
    %40 = vector.load %arg4[%c0_11, %c0_12, %c0_13] : memref<1x4x128xf32, #tpu.memory_space<vmem>>, vector<1x4x128xf32>
    %41 = vector.shape_cast %40 : vector<1x4x128xf32> to vector<4x128xf32>
    %42 = arith.addf %41, %36 : vector<4x128xf32>
    %c0_14 = arith.constant 0 : index
    %c0_15 = arith.constant 0 : index
    %c0_16 = arith.constant 0 : index
    %43 = vector.load %arg4[%c0_14, %c0_15, %c0_16] : memref<1x4x128xf32, #tpu.memory_space<vmem>>, vector<1x4x128xf32>
    %44 = vector.shape_cast %43 : vector<1x4x128xf32> to vector<4x128xf32>
    %45 = vector.shape_cast %42 : vector<4x128xf32> to vector<1x4x128xf32>
    tpu.vector_store %arg4[%c0_14, %c0_15, %c0_16], %45 {strides = array<i32>} : memref<1x4x128xf32, #tpu.memory_space<vmem>>, vector<1x4x128xf32>,
    %c0_17 = arith.constant 0 : index
    %c0_18 = arith.constant 0 : index
    %c0_19 = arith.constant 0 : index
    %46 = vector.load %arg5[%c0_17, %c0_18, %c0_19] : memref<1x4x128xf32, #tpu.memory_space<vmem>>, vector<1x4x128xf32>
    %47 = vector.shape_cast %46 : vector<1x4x128xf32> to vector<4x128xf32>
    %48 = arith.addf %47, %38 : vector<4x128xf32>
    %c0_20 = arith.constant 0 : index
    %c0_21 = arith.constant 0 : index
    %c0_22 = arith.constant 0 : index
    %49 = vector.load %arg5[%c0_20, %c0_21, %c0_22] : memref<1x4x128xf32, #tpu.memory_space<vmem>>, vector<1x4x128xf32>
    %50 = vector.shape_cast %49 : vector<1x4x128xf32> to vector<4x128xf32>
    %51 = vector.shape_cast %48 : vector<4x128xf32> to vector<1x4x128xf32>
    tpu.vector_store %arg5[%c0_20, %c0_21, %c0_22], %51 {strides = array<i32>} : memref<1x4x128xf32, #tpu.memory_space<vmem>>, vector<1x4x128xf32>,
    %c0_23 = arith.constant 0 : index
    %c0_24 = arith.constant 0 : index
    %c0_25 = arith.constant 0 : index
    %52 = vector.load %arg6[%c0_23, %c0_24, %c0_25] : memref<1x4x128xf32, #tpu.memory_space<vmem>>, vector<1x4x128xf32>
    %53 = vector.shape_cast %52 : vector<1x4x128xf32> to vector<4x128xf32>
    %54 = arith.addf %53, %39 : vector<4x128xf32>
    %c0_26 = arith.constant 0 : index
    %c0_27 = arith.constant 0 : index
    %c0_28 = arith.constant 0 : index
    %55 = vector.load %arg6[%c0_26, %c0_27, %c0_28] : memref<1x4x128xf32, #tpu.memory_space<vmem>>, vector<1x4x128xf32>
    %56 = vector.shape_cast %55 : vector<1x4x128xf32> to vector<4x128xf32>
    %57 = vector.shape_cast %54 : vector<4x128xf32> to vector<1x4x128xf32>
    tpu.vector_store %arg6[%c0_26, %c0_27, %c0_28], %57 {strides = array<i32>} : memref<1x4x128xf32, #tpu.memory_space<vmem>>, vector<1x4x128xf32>,
    return
  }
  func.func @transform_0(%arg0: i32, %arg1: i32) -> (i32, i32, i32) {
    %c0_i32 = arith.constant 0 : i32
    %c0_i32_0 = arith.constant 0 : i32
    return %arg0, %c0_i32, %arg1 : i32, i32, i32
  }
  func.func @transform_1(%arg0: i32, %arg1: i32) -> (i32, i32, i32) {
    %c0_i32 = arith.constant 0 : i32
    %c0_i32_0 = arith.constant 0 : i32
    return %arg0, %c0_i32, %arg1 : i32, i32, i32
  }
  func.func @transform_2(%arg0: i32, %arg1: i32) -> (i32, i32, i32) {
    %c0_i32 = arith.constant 0 : i32
    %c0_i32_0 = arith.constant 0 : i32
    %c0_i32_1 = arith.constant 0 : i32
    return %arg0, %c0_i32, %c0_i32_0 : i32, i32, i32
  }
  func.func @transform_3(%arg0: i32, %arg1: i32) -> (i32, i32, i32) {
    %c0_i32 = arith.constant 0 : i32
    %c0_i32_0 = arith.constant 0 : i32
    %c0_i32_1 = arith.constant 0 : i32
    return %arg0, %c0_i32, %c0_i32_0 : i32, i32, i32
  }
  func.func @transform_4(%arg0: i32, %arg1: i32) -> (i32, i32, i32) {
    %c0_i32 = arith.constant 0 : i32
    %c0_i32_0 = arith.constant 0 : i32
    %c0_i32_1 = arith.constant 0 : i32
    return %arg0, %c0_i32, %c0_i32_0 : i32, i32, i32
  }
}

</mosaic_0001>

<bundles_post_ra>
// kernel: tpu_custom_call.1
= control target key start
LH: loop header
LB: loop body
LE: loop exit
PB: predicated region body
PF: predicated region fallthrough
CT: control target
= control target key end

     0   :  { %s1267_s0 = inlined_call_operand.hbm [shape: f32[2,4,256], index: 0, kind: input, shape index: {}]   ;;  %s1268_s1 = inlined_call_operand.hbm [shape: s32[2,1,256], index: 1, kind: input, shape index: {}]   ;;  %s1269_s2 = inlined_call_operand.hbm [shape: f32[2,4,128], index: 2, kind: output, shape index: {0}]   ;;  %s1270_s3 = inlined_call_operand.hbm [shape: f32[2,4,128], index: 3, kind: output, shape index: {1}]   ;;  %s1271_s4 = inlined_call_operand.hbm [shape: f32[2,4,128], index: 4, kind: output, shape index: {2}]  }
   0x1   :  { %1275 = sst [smem:[#allocation15_spill]] %s1267_s0 }
   0x2   :  { %10 = vsyncpa [#allocation3], 0 }
   0x3   :  { %12 = vsyncpa [#allocation3 + $0x1], 0 }
   0x4   :  { %13 = vsyncpa [#allocation6], 0 }
   0x5   :  { %15 = vsyncpa [#allocation6 + $0x1], 0 }
   0x6   :  { %16 = vsyncpa [#allocation4], 0 }
   0x7   :  { %18 = vsyncpa [#allocation4 + $0x1], 0 }
   0x8   :  { %19 = vsyncpa [#allocation9], 0 }
   0x9   :  { %21 = vsyncpa [#allocation9 + $0x1], 0  ;;  %s960_s15 = smov 0   ;;  %s962_s16 = smov 0  }
   0xa   :  { %s964_s17 = smov 0   ;;  %s966_s18 = smov 0  }
   0xb   :  { %s968_s19 = smov 0   ;;  %s970_s20 = smov 0  }
   0xc LB: > { %s991_s21 = sadd.s32 4294967295, %s927_s20   ;;  %s1273_s22 = sadd.s32 4294967294, %s927_s20   ;;  %s927_s20 = sphi %s970_s20, %s27_s20   ;;  %s923_s19 = sphi %s968_s19, %s1295_s19   ;;  %s919_s18 = sphi %s966_s18, %s1294_s18   ;;  %s915_s17 = sphi %s964_s17, %s1293_s17   ;;  %s911_s16 = sphi %s962_s16, %s1292_s16   ;;  %s907_s15 = sphi %s960_s15, %s1291_s15  }
   0xd   : > { %s39_s23 = sadd.s32 1, %s923_s19  ;;  %s48_s24 = sadd.s32 1, %s915_s17 }
   0xe   : > { %p41_p0 = scmp.ge.s32.totalorder %s39_s23, 2  ;;  %p55_p1 = scmp.ne.s32.totalorder %s915_s17, %s911_s16 }
   0xf   : > { %p56_p2 = scmp.eq.s32.totalorder %s927_s20, 0  ;;  %p61_p3 = scmp.ne.s32.totalorder %s911_s16, %s907_s15 }
  0x10   : > { %s1297_s23 = smov (%p41_p0, %s39_s23), 0  ;;  %p62_p5 = scmp.eq.s32.totalorder %s991_s21, 0 }
  0x11   : > { %p1003_p4 = por %p56_p2, %p55_p1  ;;  %s43_s26 = ssub.s32 %s923_s19, %s1297_s23 }
  0x12   : > { %p113_p6 = scmp.eq.s32.totalorder %s991_s21, 1  ;;  %p46_p7 = scmp.eq.s32.totalorder %s43_s26, 0 }
  0x13   : > { %p1011_p8 = por %p62_p5, %p61_p3  ;;  %p119_p10 = scmp.eq.s32.totalorder %s1273_s22, 1 }
  0x14   : > { %p1015_p9 = por %p113_p6, %p55_p1  ;;  %p663_p13 = scmp.lt.s32.totalorder %s927_s20, 2 }
  0x15   : > { %s1277_s27 = scalar_select %p1011_p8, 1, 0 }
  0x16   : > { %s1278_s28 = scalar_select %p1015_p9, 1, 0 }
  0x17   : > { %s1022_s29 = scalar_select %p46_p7, %s915_s17, %s48_s24  }
  0x18   : > { %p1024_p11 = por %p119_p10, %p61_p3  ;;  %s1031_s5 = sand.u32 1, %s915_s17  }
  0x19   : > { %s612_s6 = sshll.u32 %s1031_s5, 3  ;;  %s634_s7 = sshll.u32 %s923_s19, 7 }
  0x1a   : > { %s1279_s30 = scalar_select %p1024_p11, 1, 0 }
  0x1b   : > { %s1280_s0 = sld [smem:[#allocation15_spill]]  ;;  %s195_s11 = scalar_lea.vmem [#allocation2], %s612_s6 }
  0x1c   : > { %s205_s12 = sshll.u32 %s195_s11, 4  ;;  %p1044_p0 = pnand %p663_p13, %p1003_p4  ;;  %s1040_s12 = int_to_ptr.vmem [resolvable:$true] %s205_s12 }
  0x1d   : > { %s192_s14 = scalar_lea.sflag [#allocation3], %s1031_s5 }
  0x1e   : > { %p723_p5 = pneg %p1044_p0 }
  0x21   : > { %s1038_s10 = scalar_lea.hbm %s1280_s0, %s634_s7  ;;  %s726_s25 = scalar_lea.hbm %s1280_s0, 256 }
  0x22   : > { %s721_s24 = scalar_lea.hbm %s1038_s10, 128  ;;  %p727_p4 = scmp.lt.u32.totalorder %s1038_s10, %s1280_s0 }
  0x23   : > { %p722_p3 = scmp.ne.s32.totalorder %s1038_s10, %s721_s24  ;;  %p728_p10 = scmp.lt.u32.totalorder %s726_s25, %s721_s24 }
  0x24   : > { %p730_p12 = scmp.lt.u32.totalorder %s721_s24, %s1038_s10 }
  0x25   : > { %p724_p6 = pnand %p723_p5, %p722_p3  ;;  %p729_p13 = por %p728_p10, %p727_p4 }
  0x27   : > { %p725_p7 = pneg %p724_p6  ;;  %p731_p1 = por %p730_p12, %p729_p13 }
  0x29   : > { %p732_p2 = pnand %p731_p1, %p725_p7 }
  0x2b   : > { %735 = shalt.err (!%p732_p2)
}
  0x2c   : > { %s736_s9 = scalar_lea.vmem %s1040_s12, 128  ;;  %s929_s11 = smov [#allocation2]  }
  0x2d   : > { %p737_p3 = scmp.ne.s32.totalorder %s1040_s12, %s736_s9  ;;  %s741_s26 = sshll.u32 %s929_s11, 4  ;;  %s742_s26 = int_to_ptr.vmem [resolvable:$false] %s741_s26 }
  0x2e   : > { %s743_s6 = scalar_lea.vmem %s742_s26, 256  ;;  %p744_p9 = scmp.lt.s32.totalorder %s1040_s12, %s742_s26 }
  0x2f   : > { %p739_p6 = pnand %p737_p3, %p723_p5  ;;  %p745_p4 = scmp.lt.s32.totalorder %s743_s6, %s736_s9 }
  0x31   : > { %p740_p11 = pneg %p739_p6  ;;  %p746_p10 = por %p745_p4, %p744_p9 }
  0x33   : > { %p747_p12 = pnand %p746_p10, %p740_p11 }
  0x35   : > { %750 = shalt.err (!%p747_p12)
}
  0x36   : > { %649 = dma.hbm_to_vmem [thread:$0]  (!%p1044_p0), %s1038_s10, 128, %s1040_s12, %s192_s14  }
  0x37   : > { %p1282_p1 = scmp.lt.s32.totalorder %s927_s20, 3  ;;  %p1283_p2 = scmp.ge.s32.totalorder %s927_s20, 1 }
  0x38   : > { %s615_s25 = sshll.u32 %s1031_s5, 1  ;;  %s635_s7 = sshll.u32 %s923_s19, 5 }
  0x39   : > { %p1080_p7 = pnand %p1283_p2, %p1282_p1  ;;  %s1089_s11 = scalar_lea.hbm %s1268_s1, %s635_s7 }
  0x3a   : > { %s216_s26 = scalar_lea.vmem [#allocation5], %s615_s25  ;;  %s213_s10 = scalar_lea.sflag [#allocation6], %s1031_s5 }
  0x3b   : > { %s1284_s24 = scalar_select %p1080_p7, 1, 0 }
  0x3c   : > { %s226_s6 = sshll.u32 %s216_s26, 4  ;;  %s751_s12 = scalar_lea.hbm %s1089_s11, 32  ;;  %s227_s6 = int_to_ptr.vmem [resolvable:$true] %s226_s6 }
  0x3d   : > { %p752_p9 = scmp.ne.s32.totalorder %s1089_s11, %s751_s12  ;;  %s756_s8 = scalar_lea.hbm %s1268_s1, 64 }
  0x3e   : > { %p757_p3 = scmp.lt.u32.totalorder %s1089_s11, %s1268_s1  ;;  %p758_p6 = scmp.lt.u32.totalorder %s756_s8, %s751_s12 }
  0x3f   : > { %p754_p11 = pnand %p752_p9, %p723_p5  ;;  %p760_p10 = scmp.lt.u32.totalorder %s751_s12, %s1089_s11 }
  0x40   : > { %p759_p4 = por %p758_p6, %p757_p3 }
  0x41   : > { %p755_p13 = pneg %p754_p11 }
  0x42   : > { %p761_p12 = por %p760_p10, %p759_p4 }
  0x44   : > { %p762_p1 = pnand %p761_p12, %p755_p13 }
  0x46   : > { %765 = shalt.err (!%p762_p1)
}
  0x47   : > { %s766_s5 = scalar_lea.vmem %s227_s6, 32  ;;  %s930_s25 = smov [#allocation5]  }
  0x48   : > { %p767_p2 = scmp.ne.s32.totalorder %s227_s6, %s766_s5  ;;  %s771_s22 = sshll.u32 %s930_s25, 4  ;;  %s772_s22 = int_to_ptr.vmem [resolvable:$false] %s771_s22 }
  0x49   : > { %s773_s26 = scalar_lea.vmem %s772_s22, 64  ;;  %p774_p8 = scmp.lt.s32.totalorder %s227_s6, %s772_s22 }
  0x4a   : > { %p769_p9 = pnand %p767_p2, %p723_p5  ;;  %p775_p7 = scmp.lt.s32.totalorder %s773_s26, %s766_s5 }
  0x4c   : > { %p770_p11 = pneg %p769_p9  ;;  %p776_p3 = por %p775_p7, %p774_p8 }
  0x4e   : > { %p777_p6 = pnand %p776_p3, %p770_p11 }
  0x50   : > { %780 = shalt.err (!%p777_p6)
}
  0x51   : > { %652 = dma.hbm_to_vmem [thread:$0]  (!%p1044_p0), %s1089_s11, 32, %s227_s6, %s213_s10  }
  0x52   : > { %p1285_p13 = scmp.ne.s32.totalorder %s1284_s24, 0 }
  0x53   : > { %s1114_s12 = sand.u32 (!%p1285_p13), 1, %s911_s16   ;;  %p1286_p5 = scmp.ne.s32.totalorder (!%p1285_p13), %s1277_s27, 0 }
  0x54   : > { %235 = sbr.rel (%p1285_p13) target bundleno = 225 (0xe1), region = 28  ;;  %s619_s14 = sshll.u32 (!%p1285_p13), %s1114_s12, 3 }
  0x55   : > { %s238_s8 = scalar_lea.sflag (!%p1285_p13), [#allocation3], %s1114_s12  ;;  %s241_s7 = scalar_lea.vmem (!%p1285_p13), [#allocation2], %s619_s14 }
  0x5b   : > { %890 = dma.done.wait (%p1286_p5), %s238_s8, 128  }
  0x5c   : > { %892 = vsyncadd (%p1286_p5), %s238_s8, 4294967168  ;;  %s620_s13 = sshll.u32 %s1114_s12, 1  ;;  %s247_s24 = scalar_lea.sflag [#allocation6], %s1114_s12 }
  0x5d   : > { %s250_s11 = scalar_lea.vmem [#allocation5], %s620_s13 }
  0x5e   : > { %894 = dma.done.wait (%p1286_p5), %s247_s24, 32  }
  0x5f   : > { %896 = vsyncadd (%p1286_p5), %s247_s24, 4294967264  ;;  %s621_s6 = sshll.u32 %s1114_s12, 2  ;;  %v352_v0 = vlaneseq  ;;  %v931_v1 = vmov 0.0   ;;  %vm303_vm0 = vcmask 1043456   ;;  %v299_v5 = vld [vmem:[%s241_s7] sm:$0xff]  ;;  %s395_s27 = sand.u32 1, %s991_s21  }
  0x60   : > { %s1129_s10 = scalar_lea.vmem [#allocation8], %s621_s6  ;;  %s1132_s9 = scalar_lea.vmem [#allocation7], %s621_s6  ;;  %v351_v6 = vld [vmem:[%s250_s11] sm:$0x3]  ;;  %v301_v7 = vcombine.high %v299_v5, %v299_v5  ;;  %v304_v8 = vsel %vm303_vm0, %v299_v5, -inf }
  0x61   : > { %297 = vst [vmem:[%s1129_s10] sm:$0xf] %v931_v1  ;;  %296 = vst [vmem:[%s1132_s9] sm:$0xf] %v931_v1  ;;  %v353_v2 = vshrl.u32 %v352_v0, 7  ;;  %s1135_s5 = scalar_lea.vmem [#allocation10], %s621_s6  ;;  %v305_v11 = vrot.slane %v304_v8, 4  ;;  %s629_s25 = sshll.u32 %s919_s18, 6 }
  0x62   : > { %298 = vst [vmem:[%s1135_s5] sm:$0xf] %v931_v1  ;;  %v311_v12 = vsel %vm303_vm0, %v301_v7, -inf  ;;  %s427_s22 = sshll.u32 %s1129_s10, 4  ;;  %s414_s26 = sshll.u32 %s1132_s9, 4  ;;  %s1156_s22 = int_to_ptr.vmem [resolvable:$true] %s427_s22  ;;  %s1163_s26 = int_to_ptr.vmem [resolvable:$true] %s414_s26 }
  0x63   : > { %v356_v3 = vsub.s32 0, %v353_v2  ;;  %v360_v4 = vsub.s32 1, %v353_v2  ;;  %v306_v13 = vmax.f32 %v304_v8, %v305_v11  ;;  %v312_v14 = vrot.slane %v311_v12, 4  ;;  %s440_s14 = sshll.u32 %s1135_s5, 4  ;;  %s1154_s13 = scalar_lea.hbm %s1270_s3, %s629_s25  ;;  %s1165_s14 = int_to_ptr.vmem [resolvable:$true] %s440_s14 }
  0x64   : > { %s1161_s24 = scalar_lea.hbm %s1269_s2, %s629_s25  ;;  %s1174_s8 = scalar_lea.sflag [#allocation9], %s395_s27 }
  0x65   : > { %v357_v9 = vrot.slane %v351_v6, %v356_v3  ;;  %v361_v10 = vrot.slane %v351_v6, %v360_v4  ;;  %v307_v19 = vrot.slane %v306_v13, 2  ;;  %v313_v20 = vmax.f32 %v311_v12, %v312_v14  ;;  %s781_s7 = scalar_lea.vmem %s1156_s22, 64  ;;  %p1287_p0 = scmp.ne.s32.totalorder %s1278_s28, 0 }
  0x66   : > { %p782_p8 = scmp.ne.s32.totalorder %s1156_s22, %s781_s7  ;;  %s932_s21 = smov [#allocation8]  }
  0x67   : > { %vm362_vm1 = vcmp.eq.s32.totalorder %v353_v2, %v357_v9  ;;  %vm363_vm2 = vcmp.eq.s32.totalorder %v353_v2, %v361_v10  ;;  %v308_v22 = vmax.f32 %v306_v13, %v307_v19  ;;  %v314_v23 = vrot.slane %v313_v20, 2  ;;  %s785_s18 = sshll.u32 %s932_s21, 4  ;;  %s786_s18 = int_to_ptr.vmem [resolvable:$false] %s785_s18 }
  0x68   : > { %v624_v15 = vsel %vm362_vm1, 1.0, %v931_v1  ;;  %v625_v16 = vsel %vm363_vm2, 1.0, %v931_v1  ;;  %v384_v57 = vld [vmem:[%s1129_s10] sm:$0xf]  ;;  %v381_v58 = vld [vmem:[%s1132_s9] sm:$0xf]  ;;  %p783_p7 = pnand %p782_p8, %p1287_p0  ;;  %p788_p10 = scmp.lt.s32.totalorder %s1156_s22, %s786_s18 }
  0x69   : > { %v387_v17 = vld [vmem:[%s1135_s5] sm:$0xf]  ;;  %v380_v18 = vadd.f32 %v625_v16, %v624_v15  ;;  %v309_v24 = vrot.slane %v308_v22, 1  ;;  %v315_v25 = vmax.f32 %v313_v20, %v314_v23  ;;  %s787_s0 = scalar_lea.vmem %s786_s18, 128 }
  0x6a   : > { %p784_p4 = pneg %p783_p7  ;;  %p789_p12 = scmp.lt.s32.totalorder %s787_s0, %s781_s7 }
  0x6b   : > { %v388_v21 = vadd.f32 %v387_v17, %v380_v18  ;;  %v310_v26 = vmax.f32 %v308_v22, %v309_v24  ;;  %v316_v27 = vrot.slane %v315_v25, 1 }
  0x6c   : > { %p790_p1 = por %p789_p12, %p788_p10 }
  0x6d   : > { %389 = vst [vmem:[%s1135_s5] sm:$0xf] %v388_v21  ;;  %v317_v28 = vmax.f32 %v315_v25, %v316_v27  ;;  %s1172_s5 = scalar_lea.hbm %s1271_s4, %s629_s25 }
  0x6e   : > { %p791_p2 = pnand %p790_p1, %p784_p4 }
  0x6f   : > { %v320_v29 = vcombine.low %v310_v26, %v317_v28 }
  0x71   : > { %v322_v30 = vsub.f32 %v299_v5, %v320_v29 }
  0x73   : > { %v323_v31 = vmul.f32 1.442695, %v322_v30 }
  0x75   : > { %715 = vpow2.f32 %v323_v31 }
  0x7f   : > { %v716_v32 = vpop.eup %715 }
  0x80   : > { %v326_v33 = vcombine.high %v716_v32, %v716_v32  ;;  %v328_v34 = vsel %vm303_vm0, %v716_v32, 0.0 }
  0x81   : > { %v329_v35 = vrot.slane %v328_v34, 4 }
  0x82   : > { %v335_v36 = vsel %vm303_vm0, %v326_v33, 0.0 }
  0x83   : > { %v330_v37 = vadd.f32 %v329_v35, %v328_v34  ;;  %v336_v38 = vrot.slane %v335_v36, 4 }
  0x85   : > { %v331_v39 = vrot.slane %v330_v37, 2  ;;  %v337_v40 = vadd.f32 %v336_v38, %v335_v36 }
  0x87   : > { %v332_v41 = vadd.f32 %v331_v39, %v330_v37  ;;  %v338_v42 = vrot.slane %v337_v40, 2 }
  0x89   : > { %v333_v43 = vrot.slane %v332_v41, 1  ;;  %v339_v44 = vadd.f32 %v338_v42, %v337_v40 }
  0x8b   : > { %v334_v45 = vadd.f32 %v333_v43, %v332_v41  ;;  %v340_v46 = vrot.slane %v339_v44, 1 }
  0x8d   : > { %v341_v47 = vadd.f32 %v340_v46, %v339_v44  ;;  %717 = vrcp.f32 %v334_v45 }
  0x8f   : > { %719 = vrcp.f32 %v341_v47 }
  0x97   : > { %v718_v48 = vpop.eup %717 }
  0x99   : > { %v720_v49 = vpop.eup %719 }
  0x9a   : > { %v348_v50 = vcombine.low %v718_v48, %v720_v49 }
  0x9c   : > { %v350_v51 = vmul.f32 %v716_v32, %v348_v50 }
  0x9e   : > { %v370_v52 = vmul.f32 %v350_v51, %v350_v51  ;;  %v374_v53 = vrot.slane %v350_v51, 4  ;;  %v368_v54 = vmul.f32 %v624_v15, %v350_v51 }
  0xa0   : > { %v378_v55 = vmul.f32 %v374_v53, %v374_v53  ;;  %v376_v56 = vmul.f32 %v625_v16, %v374_v53 }
  0xa2   : > { %v379_v59 = vadd.f32 %v378_v55, %v370_v52  ;;  %v377_v60 = vadd.f32 %v376_v56, %v368_v54 }
  0xa4   : > { %v385_v61 = vadd.f32 %v384_v57, %v379_v59  ;;  %v382_v62 = vadd.f32 %v381_v58, %v377_v60 }
  0xa6   : > { %386 = vst [vmem:[%s1129_s10] sm:$0xf] %v385_v61  ;;  %383 = vst [vmem:[%s1132_s9] sm:$0xf] %v382_v62 }
  0xa7   : > { %794 = shalt.err (!%p791_p2)
}
  0xa8   : > { %s795_s10 = scalar_lea.hbm %s1154_s13, 64  ;;  %s799_s25 = scalar_lea.hbm %s1270_s3, 128 }
  0xa9   : > { %p796_p9 = scmp.ne.s32.totalorder %s1154_s13, %s795_s10  ;;  %p800_p6 = scmp.lt.u32.totalorder %s1154_s13, %s1270_s3 }
  0xaa   : > { %p801_p13 = scmp.lt.u32.totalorder %s799_s25, %s795_s10  ;;  %p803_p8 = scmp.lt.u32.totalorder %s795_s10, %s1154_s13 }
  0xab   : > { %p797_p11 = pnand %p796_p9, %p1287_p0 }
  0xac   : > { %p802_p5 = por %p801_p13, %p800_p6 }
  0xad   : > { %p798_p3 = pneg %p797_p11 }
  0xae   : > { %p804_p7 = por %p803_p8, %p802_p5 }
  0xb0   : > { %p805_p4 = pnand %p804_p7, %p798_p3 }
  0xb2   : > { %808 = shalt.err (!%p805_p4)
}
  0xb3   : > { %641 = dma.vmem_to_hbm [thread:$0]  (%p1287_p0), %s1156_s22, 64, %s1154_s13, %s1174_s8  }
  0xb4   : > { %s391_s0 = scalar_lea.sflag [#allocation4], %s1114_s12  ;;  %s809_s7 = scalar_lea.vmem %s1163_s26, 64 }
  0xb5   : > { %p810_p10 = scmp.ne.s32.totalorder %s1163_s26, %s809_s7  ;;  %s933_s21 = smov [#allocation7]  }
  0xb6   : > { %s813_s18 = sshll.u32 %s933_s21, 4  ;;  %s814_s18 = int_to_ptr.vmem [resolvable:$false] %s813_s18 }
  0xb7   : > { %p811_p12 = pnand %p810_p10, %p1287_p0  ;;  %s815_s10 = scalar_lea.vmem %s814_s18, 128 }
  0xb8   : > { %p816_p2 = scmp.lt.s32.totalorder %s1163_s26, %s814_s18  ;;  %p817_p9 = scmp.lt.s32.totalorder %s815_s10, %s809_s7 }
  0xb9   : > { %p812_p1 = pneg %p811_p12 }
  0xba   : > { %p818_p11 = por %p817_p9, %p816_p2 }
  0xbc   : > { %p819_p3 = pnand %p818_p11, %p812_p1 }
  0xbe   : > { %822 = shalt.err (!%p819_p3)
}
  0xbf   : > { %s823_s12 = scalar_lea.hbm %s1161_s24, 64  ;;  %s827_s9 = scalar_lea.hbm %s1269_s2, 128 }
  0xc0   : > { %p824_p6 = scmp.ne.s32.totalorder %s1161_s24, %s823_s12  ;;  %p828_p8 = scmp.lt.u32.totalorder %s1161_s24, %s1269_s2 }
  0xc1   : > { %p829_p7 = scmp.lt.u32.totalorder %s827_s9, %s823_s12  ;;  %p831_p10 = scmp.lt.u32.totalorder %s823_s12, %s1161_s24 }
  0xc2   : > { %p825_p13 = pnand %p824_p6, %p1287_p0 }
  0xc3   : > { %p830_p4 = por %p829_p7, %p828_p8 }
  0xc4   : > { %p826_p5 = pneg %p825_p13 }
  0xc5   : > { %p832_p12 = por %p831_p10, %p830_p4 }
  0xc7   : > { %p833_p1 = pnand %p832_p12, %p826_p5 }
  0xc9   : > { %836 = shalt.err (!%p833_p1)
}
  0xca   : > { %640 = dma.vmem_to_hbm [thread:$0]  (%p1287_p0), %s1163_s26, 64, %s1161_s24, %s391_s0  }
  0xcb   : > { %s837_s11 = scalar_lea.vmem %s1165_s14, 64  ;;  %s934_s6 = smov [#allocation10]  }
  0xcc   : > { %p838_p2 = scmp.ne.s32.totalorder %s1165_s14, %s837_s11  ;;  %s841_s7 = sshll.u32 %s934_s6, 4  ;;  %s842_s7 = int_to_ptr.vmem [resolvable:$false] %s841_s7 }
  0xcd   : > { %s843_s21 = scalar_lea.vmem %s842_s7, 128  ;;  %p844_p3 = scmp.lt.s32.totalorder %s1165_s14, %s842_s7 }
  0xce   : > { %p839_p9 = pnand %p838_p2, %p1287_p0  ;;  %p845_p6 = scmp.lt.s32.totalorder %s843_s21, %s837_s11 }
  0xd0   : > { %p840_p11 = pneg %p839_p9  ;;  %p846_p13 = por %p845_p6, %p844_p3 }
  0xd2   : > { %p847_p5 = pnand %p846_p13, %p840_p11 }
  0xd4   : > { %850 = shalt.err (!%p847_p5)
}
  0xd5   : > { %s851_s26 = scalar_lea.hbm %s1172_s5, 64  ;;  %s855_s18 = scalar_lea.hbm %s1271_s4, 128 }
  0xd6   : > { %p852_p8 = scmp.ne.s32.totalorder %s1172_s5, %s851_s26  ;;  %p856_p10 = scmp.lt.u32.totalorder %s1172_s5, %s1271_s4 }
  0xd7   : > { %p857_p12 = scmp.lt.u32.totalorder %s855_s18, %s851_s26  ;;  %p859_p2 = scmp.lt.u32.totalorder %s851_s26, %s1172_s5 }
  0xd8   : > { %p853_p7 = pnand %p852_p8, %p1287_p0 }
  0xd9   : > { %p858_p1 = por %p857_p12, %p856_p10 }
  0xda   : > { %p854_p4 = pneg %p853_p7 }
  0xdb   : > { %p860_p9 = por %p859_p2, %p858_p1 }
  0xdd   : > { %p861_p11 = pnand %p860_p9, %p854_p4 }
  0xdf   : > { %864 = shalt.err (!%p861_p11)
}
  0xe0   : > { %642 = dma.vmem_to_hbm [thread:$0]  (%p1287_p0), %s1165_s14, 64, %s1172_s5, %s1174_s8  }
  0xe1 PF: > { %s452_s22 = sand.u32 1, %s907_s15   ;;  %p1288_p3 = scmp.ne.s32.totalorder %s1279_s30, 0 }
  0xe2   : > { %p1289_p6 = scmp.ge.s32.totalorder %s927_s20, 2  ;;  %s453_s13 = scalar_lea.sflag [#allocation4], %s452_s22 }
  0xe4   : > { %p654_p13 = pnand %p1289_p6, %p1288_p3 }
  0xe6   : > { %898 = dma.done.wait (!%p654_p13), %s453_s13, 64  }
  0xe7   : > { %900 = vsyncadd (!%p654_p13), %s453_s13, 4294967232  ;;  %s1290_s9 = sadd.s32 4294967294, %s927_s20  }
  0xe8   : > { %s461_s27 = sand.u32 1, %s1290_s9  }
  0xe9   : > { %s462_s25 = scalar_lea.sflag [#allocation9], %s461_s27 }
  0xea   : > { %902 = dma.done.wait (!%p654_p13), %s462_s25, 128  }
  0xeb   : > { %904 = vsyncadd (!%p654_p13), %s462_s25, 4294967168  ;;  %s27_s20 = sadd.s32 1, %s927_s20   ;;  %s1291_s15 = smov %s911_s16 }
  0xec   : > { %p24_p0 = scmp.ge.s32.totalorder %s27_s20, 4   ;;  %s1292_s16 = smov %s915_s17 }
  0xed   : > { %s1293_s17 = smov %s1022_s29  ;;  %s1294_s18 = smov %s923_s19 }
  0xee   : > { %s1295_s19 = smov %s1297_s23  ;;  %26 = sbr.rel (!%p24_p0) target bundleno = 12 (0xc), region = 122 }
  0xf5   :  { %476 = vsyncpa [#allocation3], 1 }
  0xf6   :  { %478 = vsyncpa [#allocation3 + $0x1], 1 }
  0xf7   :  { %479 = vsyncpa [#allocation6], 1 }
  0xf8   :  { %481 = vsyncpa [#allocation6 + $0x1], 1 }
  0xf9   :  { %482 = vsyncpa [#allocation4], 1 }
  0xfa   :  { %484 = vsyncpa [#allocation4 + $0x1], 1 }
  0xfb   :  { %485 = vsyncpa [#allocation9], 1 }
  0xfc   :  { %487 = vsyncpa [#allocation9 + $0x1], 1 }

</bundles_post_ra>
